<compile_context>
chip_gen: v6e
topology: v6e:2x2x1
jax: 0.10.0
libtpu: 0.0.40
codegen_flags: <defaults>
</compile_context>

<pallas_src>
import functools

import jax
import jax.numpy as jnp
from jax.experimental import pallas as pl
from jax.experimental.pallas import tpu as pltpu

_LANES = 128
_SUBLANES = 8
_NUM_STATS = 7  # inter0, inter1, den0, den1, bce_pos, bce_neg, sum_y


def _pick_tile_rows(rows, max_ts):
    """Largest divisor of `rows` (<= max_ts) that is a multiple of 8 (prefer 32)."""
    if rows <= max_ts:
        return rows
    for step in (32, 8):
        start = (max_ts // step) * step
        for cand in range(start, step - 1, -step):
            if rows % cand == 0:
                return cand
    return rows


def _bce_dice_kernel(x_ref, t_ref, acc_ref):
    """Accumulating reduction kernel.

    x_ref   : (1, C, TS, 128) logits tile
    t_ref   : (1, TS, 128)    binary labels tile (any int dtype)
    acc_ref : (1, 7, 8, 128)  f32 lane-wide partial accumulators, resident
              across the tile axis:
        [0] sum sigmoid(x0) * (1-y)        (dice intersection, channel 0)
        [1] sum sigmoid(x1) * y            (dice intersection, channel 1)
        [2] sum sigmoid(x0)^2              (dice denom pred,   channel 0)
        [3] sum sigmoid(x1)^2              (dice denom pred,   channel 1)
        [4] sum y     * (softplus(-x0)+softplus(-x1))   (BCE pos term)
        [5] sum (1-y) * (softplus(+x0)+softplus(+x1))   (BCE neg term)
        [6] sum y
    """
    t_idx = pl.program_id(1)

    @pl.when(t_idx == 0)
    def _init():
        acc_ref[...] = jnp.zeros_like(acc_ref)

    x = x_ref[0].astype(jnp.float32)          # (C, TS, 128)
    y = t_ref[0].astype(jnp.float32)          # (TS, 128)
    one_m_y = 1.0 - y

    # Shared transcendentals: one exp feeds sigmoid and both softplus terms.
    e = jnp.exp(-jnp.abs(x))                  # EUP
    log_term = jnp.log1p(e)                   # log(1 + exp(-|x|)), EUP
    inv = pl.reciprocal(1.0 + e, approx=True)
    inv = inv * (2.0 - (1.0 + e) * inv)       # one Newton step -> ~f32 precision
    sig = jnp.where(x >= 0.0, inv, e * inv)   # sigmoid(x)
    sp_pos = jnp.maximum(x, 0.0) + log_term   # softplus(+x)
    sp_neg = sp_pos - x                       # softplus(-x) == softplus(x) - x

    sig0 = sig[0]
    sig1 = sig[1]
    slabs = (
        sig0 * one_m_y,                       # dice intersection, channel 0
        sig1 * y,                             # dice intersection, channel 1
        sig0 * sig0,                          # dice denom (pred), channel 0
        sig1 * sig1,                          # dice denom (pred), channel 1
        y * (sp_neg[0] + sp_neg[1]),          # BCE positive-class term (summed over C)
        one_m_y * (sp_pos[0] + sp_pos[1]),    # BCE negative-class term (summed over C)
        y,                                    # sum(target)
    )

    ts = y.shape[0]
    for s, slab in enumerate(slabs):
        # Fold sublane groups with pure VPU adds; the cross-lane reduce to a
        # scalar happens once in the (tiny) wrapper epilogue, not per tile.
        acc_ref[0, s] += jnp.sum(slab.reshape(ts // _SUBLANES, _SUBLANES, _LANES),
                                 axis=0)


@functools.partial(jax.jit, static_argnames=("max_ts",))
def bce_dice_loss(logits, target, max_ts=512):
    """Returns (loss_1, channel_score) matching BCEDiceLoss.forward."""
    N, C, D, H, W = logits.shape
    assert C == 2, "DiceLoss path in this module uses classes=2"
    mn = D * H * W
    m_total = float(N * mn)                   # true (unpadded) voxel count

    # Layout plumbing only: contiguous reshapes, no transpose, no dtype widening.
    x3 = logits.reshape(N, C, mn)
    t2 = target.reshape(N, mn)
    pad = (-mn) % (_SUBLANES * _LANES)
    if pad:
        # Padded tail contributes exactly zero to every statistic
        # (exp(-1000)==0, label 0); m_total above uses the true count.
        x3 = jnp.pad(x3, ((0, 0), (0, 0), (0, pad)), constant_values=-1e3)
        t2 = jnp.pad(t2, ((0, 0), (0, pad)), constant_values=0)
    rows = (mn + pad) // _LANES
    ts = _pick_tile_rows(rows, max_ts)
    num_tiles = rows // ts
    x4 = x3.reshape(N, C, rows, _LANES)
    t3 = t2.reshape(N, rows, _LANES)

    out = pl.pallas_call(
        _bce_dice_kernel,
        out_shape=jax.ShapeDtypeStruct((N, _NUM_STATS, _SUBLANES, _LANES),
                                       jnp.float32),
        grid_spec=pltpu.PrefetchScalarGridSpec(
            num_scalar_prefetch=0,
            grid=(N, num_tiles),
            in_specs=[
                pl.BlockSpec((1, C, ts, _LANES), lambda n, t: (n, 0, t, 0)),
                pl.BlockSpec((1, ts, _LANES), lambda n, t: (n, t, 0)),
            ],
            out_specs=pl.BlockSpec((1, _NUM_STATS, _SUBLANES, _LANES),
                                   lambda n, t: (n, 0, 0, 0)),
        ),
        compiler_params=pltpu.CompilerParams(
            dimension_semantics=("parallel", "arbitrary"),
            vmem_limit_bytes=32 * 1024 * 1024,
        ),
    )(x4, t3)

    # Tiny epilogue: reduce the lane-wide per-batch partials to scalars.
    stats = jnp.sum(out, axis=(0, 2, 3))      # (7,)
    inter0, inter1, den0, den1 = stats[0], stats[1], stats[2], stats[3]
    p_sum, n_sum, sum_y = stats[4], stats[5], stats[6]

    eps = 1e-10
    count_pos = sum_y + eps                   # torch.sum(target) + eps
    count_neg = m_total - sum_y               # torch.sum(1 - target)
    beta = count_neg / count_pos              # dynamic pos_weight
    loss_1 = (beta * p_sum + n_sum) / (C * m_total)

    t_sum0 = m_total - sum_y                  # sum(onehot channel 0) == sum(onehot^2)
    t_sum1 = sum_y
    score0 = 2.0 * inter0 / jnp.maximum(den0 + t_sum0, 1e-6)
    score1 = 2.0 * inter1 / jnp.maximum(den1 + t_sum1, 1e-6)
    channel_score = jnp.stack([score0, score1])

    return loss_1, channel_score


def _reference(logits, target):
    """Pure-JAX reference for verification."""
    x = logits.astype(jnp.float32)
    C = x.shape[1]
    y = target.astype(jnp.float32)[:, None]          # (N,1,D,H,W)
    count_pos = jnp.sum(y) + 1e-10
    count_neg = jnp.sum(1.0 - y)
    beta = count_neg / count_pos
    sp = lambda z: jnp.maximum(z, 0.0) + jnp.log1p(jnp.exp(-jnp.abs(z)))
    per_el = beta * y * sp(-x) + (1.0 - y) * sp(x)   # target broadcast over channels
    loss1 = jnp.mean(per_el)

    sig = jax.nn.sigmoid(x)
    t1h = jax.nn.one_hot(target, C, axis=1, dtype=jnp.float32)
    flat = lambda a: jnp.moveaxis(a, 1, 0).reshape(C, -1)
    si, ti = flat(sig), flat(t1h)
    inter = jnp.sum(si * ti, axis=-1)
    den = jnp.maximum(jnp.sum(si * si, axis=-1) + jnp.sum(ti * ti, axis=-1), 1e-6)
    return loss1, 2.0 * inter / den


if __name__ == "__main__":
    # small shapes consistent with a 3D segmentation loss, classes = 2
    N, C, D, H, W = 2, 2, 8, 16, 16
    key = jax.random.PRNGKey(0)
    k_x, k_t = jax.random.split(key)
    logits = jax.random.normal(k_x, (N, C, D, H, W), dtype=jnp.float32)
    target = jax.random.bernoulli(k_t, 0.3, (N, D, H, W)).astype(jnp.int8)

    loss_1, channel_score = bce_dice_loss(logits, target)
    jax.block_until_ready((loss_1, channel_score))

    ref_loss, ref_score = _reference(logits, target)
    assert jnp.allclose(loss_1, ref_loss, rtol=1e-4, atol=1e-5), (loss_1, ref_loss)
    assert jnp.allclose(channel_score, ref_score, rtol=1e-4, atol=1e-5), (
        channel_score, ref_score)

    print("KERNEL_OK")
</pallas_src>

<mosaic_0001>
module attributes {stable_mosaic.version = 11 : i64} {
  func.func @_bce_dice_kernel(%arg0: i32, %arg1: i32, %arg2: memref<1x2x16x128xf32, #tpu.memory_space<vmem>>, %arg3: memref<1x16x128xi8, #tpu.memory_space<vmem>>, %arg4: memref<1x7x8x128xf32, #tpu.memory_space<vmem>>) attributes {dimension_semantics = [#tpu.dimension_semantics<parallel>, #tpu.dimension_semantics<arbitrary>], iteration_bounds = array<i64: 2, 1>, scalar_prefetch = 0 : i64, scratch_operands = 0 : i64, tpu.core_type = #tpu.core_type<tc>, window_params = [{transform_indices = @transform_0, window_bounds = array<i64: 1, 2, 16, 128>}, {transform_indices = @transform_1, window_bounds = array<i64: 1, 16, 128>}, {transform_indices = @transform_2, window_bounds = array<i64: 1, 7, 8, 128>}]} {
    %c0_i32 = arith.constant 0 : i32
    %0 = arith.cmpi eq, %arg1, %c0_i32 : i32
    %1 = arith.extui %0 : i1 to i32
    %c0_i32_0 = arith.constant 0 : i32
    %2 = arith.cmpi ne, %1, %c0_i32_0 : i32
    scf.if %2 {
      %cst_70 = arith.constant 0.000000e+00 : f32
      %108 = vector.broadcast %cst_70 : f32 to vector<1x7x8x128xf32>
      %c0_71 = arith.constant 0 : index
      %c0_72 = arith.constant 0 : index
      %c0_73 = arith.constant 0 : index
      %c0_74 = arith.constant 0 : index
      %109 = vector.load %arg4[%c0_71, %c0_72, %c0_73, %c0_74] : memref<1x7x8x128xf32, #tpu.memory_space<vmem>>, vector<1x7x8x128xf32>
      tpu.vector_store %arg4[%c0_71, %c0_72, %c0_73, %c0_74], %108 {strides = array<i32>} : memref<1x7x8x128xf32, #tpu.memory_space<vmem>>, vector<1x7x8x128xf32>,
    } else {
    }
    %c0 = arith.constant 0 : index
    %c0_1 = arith.constant 0 : index
    %c0_2 = arith.constant 0 : index
    %c0_3 = arith.constant 0 : index
    %3 = vector.load %arg2[%c0, %c0_1, %c0_2, %c0_3] : memref<1x2x16x128xf32, #tpu.memory_space<vmem>>, vector<1x2x16x128xf32>
    %4 = vector.shape_cast %3 : vector<1x2x16x128xf32> to vector<2x16x128xf32>
    %c0_4 = arith.constant 0 : index
    %c0_5 = arith.constant 0 : index
    %c0_6 = arith.constant 0 : index
    %5 = vector.load %arg3[%c0_4, %c0_5, %c0_6] : memref<1x16x128xi8, #tpu.memory_space<vmem>>, vector<1x16x128xi8>
    %6 = vector.shape_cast %5 : vector<1x16x128xi8> to vector<16x128xi8>
    %7 = arith.sitofp %6 : vector<16x128xi8> to vector<16x128xf32>
    %cst = arith.constant 1.000000e+00 : f32
    %8 = vector.broadcast %cst : f32 to vector<16x128xf32>
    %9 = arith.subf %8, %7 : vector<16x128xf32>
    %10 = math.absf %4 : vector<2x16x128xf32>
    %cst_7 = arith.constant 0.000000e+00 : f32
    %11 = vector.broadcast %cst_7 : f32 to vector<2x16x128xf32>
    %12 = arith.subf %11, %10 : vector<2x16x128xf32>
    %13 = math.exp %12 : vector<2x16x128xf32>
    %14 = math.log1p %13 : vector<2x16x128xf32>
    %cst_8 = arith.constant 1.000000e+00 : f32
    %15 = vector.broadcast %cst_8 : f32 to vector<2x16x128xf32>
    %16 = arith.addf %15, %13 : vector<2x16x128xf32>
    %17 = tpu.reciprocal %16 {approx = true} : vector<2x16x128xf32> -> vector<2x16x128xf32>
    %cst_9 = arith.constant 1.000000e+00 : f32
    %18 = vector.broadcast %cst_9 : f32 to vector<2x16x128xf32>
    %19 = arith.addf %18, %13 : vector<2x16x128xf32>
    %20 = arith.mulf %19, %17 : vector<2x16x128xf32>
    %cst_10 = arith.constant 2.000000e+00 : f32
    %21 = vector.broadcast %cst_10 : f32 to vector<2x16x128xf32>
    %22 = arith.subf %21, %20 : vector<2x16x128xf32>
    %23 = arith.mulf %17, %22 : vector<2x16x128xf32>
    %cst_11 = arith.constant 0.000000e+00 : f32
    %24 = vector.broadcast %cst_11 : f32 to vector<2x16x128xf32>
    %25 = arith.cmpf oge, %4, %24 : vector<2x16x128xf32>
    %26 = arith.mulf %13, %23 : vector<2x16x128xf32>
    %27 = arith.select %25, %23, %26 : vector<2x16x128xi1>, vector<2x16x128xf32>
    %cst_12 = arith.constant 0.000000e+00 : f32
    %28 = vector.broadcast %cst_12 : f32 to vector<2x16x128xf32>
    %29 = arith.maximumf %4, %28 : vector<2x16x128xf32>
    %30 = arith.addf %29, %14 : vector<2x16x128xf32>
    %31 = arith.subf %30, %4 : vector<2x16x128xf32>
    %32 = vector.extract_strided_slice %27 {offsets = [0, 0, 0], sizes = [1, 16, 128], strides = [1, 1, 1]} : vector<2x16x128xf32> to vector<1x16x128xf32>
    %33 = vector.shape_cast %32 : vector<1x16x128xf32> to vector<16x128xf32>
    %34 = vector.extract_strided_slice %27 {offsets = [1, 0, 0], sizes = [1, 16, 128], strides = [1, 1, 1]} : vector<2x16x128xf32> to vector<1x16x128xf32>
    %35 = vector.shape_cast %34 : vector<1x16x128xf32> to vector<16x128xf32>
    %36 = arith.mulf %33, %9 : vector<16x128xf32>
    %37 = arith.mulf %35, %7 : vector<16x128xf32>
    %38 = arith.mulf %33, %33 : vector<16x128xf32>
    %39 = arith.mulf %35, %35 : vector<16x128xf32>
    %40 = vector.extract_strided_slice %31 {offsets = [0, 0, 0], sizes = [1, 16, 128], strides = [1, 1, 1]} : vector<2x16x128xf32> to vector<1x16x128xf32>
    %41 = vector.shape_cast %40 : vector<1x16x128xf32> to vector<16x128xf32>
    %42 = vector.extract_strided_slice %31 {offsets = [1, 0, 0], sizes = [1, 16, 128], strides = [1, 1, 1]} : vector<2x16x128xf32> to vector<1x16x128xf32>
    %43 = vector.shape_cast %42 : vector<1x16x128xf32> to vector<16x128xf32>
    %44 = arith.addf %41, %43 : vector<16x128xf32>
    %45 = arith.mulf %7, %44 : vector<16x128xf32>
    %46 = vector.extract_strided_slice %30 {offsets = [0, 0, 0], sizes = [1, 16, 128], strides = [1, 1, 1]} : vector<2x16x128xf32> to vector<1x16x128xf32>
    %47 = vector.shape_cast %46 : vector<1x16x128xf32> to vector<16x128xf32>
    %48 = vector.extract_strided_slice %30 {offsets = [1, 0, 0], sizes = [1, 16, 128], strides = [1, 1, 1]} : vector<2x16x128xf32> to vector<1x16x128xf32>
    %49 = vector.shape_cast %48 : vector<1x16x128xf32> to vector<16x128xf32>
    %50 = arith.addf %47, %49 : vector<16x128xf32>
    %51 = arith.mulf %9, %50 : vector<16x128xf32>
    %c0_13 = arith.constant 0 : index
    %c0_14 = arith.constant 0 : index
    %c0_15 = arith.constant 0 : index
    %c0_16 = arith.constant 0 : index
    %52 = vector.load %arg4[%c0_13, %c0_14, %c0_15, %c0_16] : memref<1x7x8x128xf32, #tpu.memory_space<vmem>>, vector<1x1x8x128xf32>
    %53 = vector.shape_cast %52 : vector<1x1x8x128xf32> to vector<8x128xf32>
    %54 = vector.shape_cast %36 : vector<16x128xf32> to vector<2x8x128xf32>
    %cst_17 = arith.constant dense<0.000000e+00> : vector<8x128xf32>
    %55 = vector.multi_reduction <add>, %54, %cst_17 [0] : vector<2x8x128xf32> to vector<8x128xf32>
    %56 = arith.addf %53, %55 : vector<8x128xf32>
    %c0_18 = arith.constant 0 : index
    %c0_19 = arith.constant 0 : index
    %c0_20 = arith.constant 0 : index
    %c0_21 = arith.constant 0 : index
    %57 = vector.load %arg4[%c0_18, %c0_19, %c0_20, %c0_21] : memref<1x7x8x128xf32, #tpu.memory_space<vmem>>, vector<1x1x8x128xf32>
    %58 = vector.shape_cast %57 : vector<1x1x8x128xf32> to vector<8x128xf32>
    %59 = vector.shape_cast %56 : vector<8x128xf32> to vector<1x1x8x128xf32>
    tpu.vector_store %arg4[%c0_18, %c0_19, %c0_20, %c0_21], %59 {strides = array<i32>} : memref<1x7x8x128xf32, #tpu.memory_space<vmem>>, vector<1x1x8x128xf32>,
    %c0_22 = arith.constant 0 : index
    %c1 = arith.constant 1 : index
    %c0_23 = arith.constant 0 : index
    %c0_24 = arith.constant 0 : index
    %60 = vector.load %arg4[%c0_22, %c1, %c0_23, %c0_24] : memref<1x7x8x128xf32, #tpu.memory_space<vmem>>, vector<1x1x8x128xf32>
    %61 = vector.shape_cast %60 : vector<1x1x8x128xf32> to vector<8x128xf32>
    %62 = vector.shape_cast %37 : vector<16x128xf32> to vector<2x8x128xf32>
    %cst_25 = arith.constant dense<0.000000e+00> : vector<8x128xf32>
    %63 = vector.multi_reduction <add>, %62, %cst_25 [0] : vector<2x8x128xf32> to vector<8x128xf32>
    %64 = arith.addf %61, %63 : vector<8x128xf32>
    %c0_26 = arith.constant 0 : index
    %c1_27 = arith.constant 1 : index
    %c0_28 = arith.constant 0 : index
    %c0_29 = arith.constant 0 : index
    %65 = vector.load %arg4[%c0_26, %c1_27, %c0_28, %c0_29] : memref<1x7x8x128xf32, #tpu.memory_space<vmem>>, vector<1x1x8x128xf32>
    %66 = vector.shape_cast %65 : vector<1x1x8x128xf32> to vector<8x128xf32>
    %67 = vector.shape_cast %64 : vector<8x128xf32> to vector<1x1x8x128xf32>
    tpu.vector_store %arg4[%c0_26, %c1_27, %c0_28, %c0_29], %67 {strides = array<i32>} : memref<1x7x8x128xf32, #tpu.memory_space<vmem>>, vector<1x1x8x128xf32>,
    %c0_30 = arith.constant 0 : index
    %c2 = arith.constant 2 : index
    %c0_31 = arith.constant 0 : index
    %c0_32 = arith.constant 0 : index
    %68 = vector.load %arg4[%c0_30, %c2, %c0_31, %c0_32] : memref<1x7x8x128xf32, #tpu.memory_space<vmem>>, vector<1x1x8x128xf32>
    %69 = vector.shape_cast %68 : vector<1x1x8x128xf32> to vector<8x128xf32>
    %70 = vector.shape_cast %38 : vector<16x128xf32> to vector<2x8x128xf32>
    %cst_33 = arith.constant dense<0.000000e+00> : vector<8x128xf32>
    %71 = vector.multi_reduction <add>, %70, %cst_33 [0] : vector<2x8x128xf32> to vector<8x128xf32>
    %72 = arith.addf %69, %71 : vector<8x128xf32>
    %c0_34 = arith.constant 0 : index
    %c2_35 = arith.constant 2 : index
    %c0_36 = arith.constant 0 : index
    %c0_37 = arith.constant 0 : index
    %73 = vector.load %arg4[%c0_34, %c2_35, %c0_36, %c0_37] : memref<1x7x8x128xf32, #tpu.memory_space<vmem>>, vector<1x1x8x128xf32>
    %74 = vector.shape_cast %73 : vector<1x1x8x128xf32> to vector<8x128xf32>
    %75 = vector.shape_cast %72 : vector<8x128xf32> to vector<1x1x8x128xf32>
    tpu.vector_store %arg4[%c0_34, %c2_35, %c0_36, %c0_37], %75 {strides = array<i32>} : memref<1x7x8x128xf32, #tpu.memory_space<vmem>>, vector<1x1x8x128xf32>,
    %c0_38 = arith.constant 0 : index
    %c3 = arith.constant 3 : index
    %c0_39 = arith.constant 0 : index
    %c0_40 = arith.constant 0 : index
    %76 = vector.load %arg4[%c0_38, %c3, %c0_39, %c0_40] : memref<1x7x8x128xf32, #tpu.memory_space<vmem>>, vector<1x1x8x128xf32>
    %77 = vector.shape_cast %76 : vector<1x1x8x128xf32> to vector<8x128xf32>
    %78 = vector.shape_cast %39 : vector<16x128xf32> to vector<2x8x128xf32>
    %cst_41 = arith.constant dense<0.000000e+00> : vector<8x128xf32>
    %79 = vector.multi_reduction <add>, %78, %cst_41 [0] : vector<2x8x128xf32> to vector<8x128xf32>
    %80 = arith.addf %77, %79 : vector<8x128xf32>
    %c0_42 = arith.constant 0 : index
    %c3_43 = arith.constant 3 : index
    %c0_44 = arith.constant 0 : index
    %c0_45 = arith.constant 0 : index
    %81 = vector.load %arg4[%c0_42, %c3_43, %c0_44, %c0_45] : memref<1x7x8x128xf32, #tpu.memory_space<vmem>>, vector<1x1x8x128xf32>
    %82 = vector.shape_cast %81 : vector<1x1x8x128xf32> to vector<8x128xf32>
    %83 = vector.shape_cast %80 : vector<8x128xf32> to vector<1x1x8x128xf32>
    tpu.vector_store %arg4[%c0_42, %c3_43, %c0_44, %c0_45], %83 {strides = array<i32>} : memref<1x7x8x128xf32, #tpu.memory_space<vmem>>, vector<1x1x8x128xf32>,
    %c0_46 = arith.constant 0 : index
    %c4 = arith.constant 4 : index
    %c0_47 = arith.constant 0 : index
    %c0_48 = arith.constant 0 : index
    %84 = vector.load %arg4[%c0_46, %c4, %c0_47, %c0_48] : memref<1x7x8x128xf32, #tpu.memory_space<vmem>>, vector<1x1x8x128xf32>
    %85 = vector.shape_cast %84 : vector<1x1x8x128xf32> to vector<8x128xf32>
    %86 = vector.shape_cast %45 : vector<16x128xf32> to vector<2x8x128xf32>
    %cst_49 = arith.constant dense<0.000000e+00> : vector<8x128xf32>
    %87 = vector.multi_reduction <add>, %86, %cst_49 [0] : vector<2x8x128xf32> to vector<8x128xf32>
    %88 = arith.addf %85, %87 : vector<8x128xf32>
    %c0_50 = arith.constant 0 : index
    %c4_51 = arith.constant 4 : index
    %c0_52 = arith.constant 0 : index
    %c0_53 = arith.constant 0 : index
    %89 = vector.load %arg4[%c0_50, %c4_51, %c0_52, %c0_53] : memref<1x7x8x128xf32, #tpu.memory_space<vmem>>, vector<1x1x8x128xf32>
    %90 = vector.shape_cast %89 : vector<1x1x8x128xf32> to vector<8x128xf32>
    %91 = vector.shape_cast %88 : vector<8x128xf32> to vector<1x1x8x128xf32>
    tpu.vector_store %arg4[%c0_50, %c4_51, %c0_52, %c0_53], %91 {strides = array<i32>} : memref<1x7x8x128xf32, #tpu.memory_space<vmem>>, vector<1x1x8x128xf32>,
    %c0_54 = arith.constant 0 : index
    %c5 = arith.constant 5 : index
    %c0_55 = arith.constant 0 : index
    %c0_56 = arith.constant 0 : index
    %92 = vector.load %arg4[%c0_54, %c5, %c0_55, %c0_56] : memref<1x7x8x128xf32, #tpu.memory_space<vmem>>, vector<1x1x8x128xf32>
    %93 = vector.shape_cast %92 : vector<1x1x8x128xf32> to vector<8x128xf32>
    %94 = vector.shape_cast %51 : vector<16x128xf32> to vector<2x8x128xf32>
    %cst_57 = arith.constant dense<0.000000e+00> : vector<8x128xf32>
    %95 = vector.multi_reduction <add>, %94, %cst_57 [0] : vector<2x8x128xf32> to vector<8x128xf32>
    %96 = arith.addf %93, %95 : vector<8x128xf32>
    %c0_58 = arith.constant 0 : index
    %c5_59 = arith.constant 5 : index
    %c0_60 = arith.constant 0 : index
    %c0_61 = arith.constant 0 : index
    %97 = vector.load %arg4[%c0_58, %c5_59, %c0_60, %c0_61] : memref<1x7x8x128xf32, #tpu.memory_space<vmem>>, vector<1x1x8x128xf32>
    %98 = vector.shape_cast %97 : vector<1x1x8x128xf32> to vector<8x128xf32>
    %99 = vector.shape_cast %96 : vector<8x128xf32> to vector<1x1x8x128xf32>
    tpu.vector_store %arg4[%c0_58, %c5_59, %c0_60, %c0_61], %99 {strides = array<i32>} : memref<1x7x8x128xf32, #tpu.memory_space<vmem>>, vector<1x1x8x128xf32>,
    %c0_62 = arith.constant 0 : index
    %c6 = arith.constant 6 : index
    %c0_63 = arith.constant 0 : index
    %c0_64 = arith.constant 0 : index
    %100 = vector.load %arg4[%c0_62, %c6, %c0_63, %c0_64] : memref<1x7x8x128xf32, #tpu.memory_space<vmem>>, vector<1x1x8x128xf32>
    %101 = vector.shape_cast %100 : vector<1x1x8x128xf32> to vector<8x128xf32>
    %102 = vector.shape_cast %7 : vector<16x128xf32> to vector<2x8x128xf32>
    %cst_65 = arith.constant dense<0.000000e+00> : vector<8x128xf32>
    %103 = vector.multi_reduction <add>, %102, %cst_65 [0] : vector<2x8x128xf32> to vector<8x128xf32>
    %104 = arith.addf %101, %103 : vector<8x128xf32>
    %c0_66 = arith.constant 0 : index
    %c6_67 = arith.constant 6 : index
    %c0_68 = arith.constant 0 : index
    %c0_69 = arith.constant 0 : index
    %105 = vector.load %arg4[%c0_66, %c6_67, %c0_68, %c0_69] : memref<1x7x8x128xf32, #tpu.memory_space<vmem>>, vector<1x1x8x128xf32>
    %106 = vector.shape_cast %105 : vector<1x1x8x128xf32> to vector<8x128xf32>
    %107 = vector.shape_cast %104 : vector<8x128xf32> to vector<1x1x8x128xf32>
    tpu.vector_store %arg4[%c0_66, %c6_67, %c0_68, %c0_69], %107 {strides = array<i32>} : memref<1x7x8x128xf32, #tpu.memory_space<vmem>>, vector<1x1x8x128xf32>,
    return
  }
  func.func @transform_0(%arg0: i32, %arg1: i32) -> (i32, i32, i32, i32) {
    %c0_i32 = arith.constant 0 : i32
    %c0_i32_0 = arith.constant 0 : i32
    %c0_i32_1 = arith.constant 0 : i32
    return %arg0, %c0_i32, %arg1, %c0_i32_0 : i32, i32, i32, i32
  }
  func.func @transform_1(%arg0: i32, %arg1: i32) -> (i32, i32, i32) {
    %c0_i32 = arith.constant 0 : i32
    %c0_i32_0 = arith.constant 0 : i32
    return %arg0, %arg1, %c0_i32 : i32, i32, i32
  }
  func.func @transform_2(%arg0: i32, %arg1: i32) -> (i32, i32, i32, i32) {
    %c0_i32 = arith.constant 0 : i32
    %c0_i32_0 = arith.constant 0 : i32
    %c0_i32_1 = arith.constant 0 : i32
    %c0_i32_2 = arith.constant 0 : i32
    return %arg0, %c0_i32, %c0_i32_0, %c0_i32_1 : i32, i32, i32, i32
  }
}

</mosaic_0001>

<bundles_post_ra>
// kernel: bce_dice_loss.1
= control target key start
LH: loop header
LB: loop body
LE: loop exit
PB: predicated region body
PF: predicated region fallthrough
CT: control target
= control target key end

     0   :  { %s583_s9 = smov 0   ;;  %s585_s10 = smov 0   ;;  %s737_s0 = inlined_call_operand.vmem [shape: f32[2,2,16,128], index: 0, kind: input, shape index: {}]   ;;  %s738_s1 = inlined_call_operand.vmem [shape: s8[2,16,128], index: 1, kind: input, shape index: {}]   ;;  %s739_s2 = inlined_call_operand.vmem [shape: f32[2,7,8,128], index: 2, kind: output, shape index: {}]  }
   0x1   :  { %s587_s11 = smov 0  }
   0x2 LB: > { %s24_s12 = sadd.s32 1, %s562_s10  ;;  %p468_p0 = scmp.ge.s32.totalorder %s566_s11, 1  ;;  %s566_s11 = sphi %s587_s11, %s12_s11   ;;  %s562_s10 = sphi %s585_s10, %s749_s10   ;;  %s558_s9 = sphi %s583_s9, %s748_s9  }
   0x3   : > { %p26_p1 = scmp.ge.s32.totalorder %s24_s12, 2  ;;  %p148_p2 = scmp.lt.s32.totalorder %s566_s11, 3 }
   0x5   : > { %s751_s12 = smov (%p26_p1, %s24_s12), 0  ;;  %p149_p3 = pnand %p468_p0, %p148_p2 }
   0x6   : > { %p184_p4 = scmp.lt.s32.totalorder (!%p149_p3), %s558_s9, 1 }
   0x7   : > { %152 = sbr.rel (%p149_p3) target bundleno = 76 (0x4c), region = 28 }
   0xc   : > { %s753_s9 = smov (!%p184_p4, %s558_s9), 1 }
   0xd   : > { %s488_s13 = sshll.u32 %s753_s9, 5  ;;  %s489_s17 = sshll.u32 %s753_s9, 2 }
   0xe   : > { %s191_s16 = scalar_lea.vmem %s737_s0, %s488_s13  ;;  %s201_s20 = scalar_lea.vmem %s738_s1, %s489_s17 }
   0xf   : > { %v611_v0 = vld [vmem:[%s191_s16] sm:$0xff]  ;;  %v613_v1 = vld [vmem:[%s191_s16 + $0x8] sm:$0xff]  ;;  %v615_v2 = vld [vmem:[%s191_s16 + $0x10] sm:$0xff]  ;;  %s494_s21 = smul.u32 56, %s753_s9 }
  0x10   : > { %v491_v3 = vld [vmem:[%s201_s20] sm:$0xf]   ;;  %v231_v4 = vand.u32 2147483647, %v611_v0  ;;  %v232_v5 = vand.u32 2147483647, %v613_v1 }
  0x11   : > { %v492_v6 = vunpack.c.0.s8 %v491_v3  ;;  %v493_v7 = vunpack.c.1.s8 %v491_v3  ;;  %v619_v8 = vld [vmem:[%s191_s16 + $0x18] sm:$0xff]  ;;  %v233_v11 = vand.u32 2147483647, %v615_v2  ;;  %s633_s24 = scalar_lea.vmem %s739_s2, %s494_s21  ;;  %vm303_vm0 = vcmp.ge.f32.partialorder %v611_v0, 0.0 }
  0x12   : > { %v235_v9 = vsub.f32 0.0, %v231_v4  ;;  %v236_v10 = vsub.f32 0.0, %v232_v5  ;;  %v234_v12 = vand.u32 2147483647, %v619_v8  ;;  %vm304_vm1 = vcmp.ge.f32.partialorder %v613_v1, 0.0 }
  0x13   : > { %v237_v15 = vsub.f32 0.0, %v233_v11  ;;  %v624_v17 = vcvt.s32.f32 %v492_v6  ;;  %v626_v18 = vcvt.s32.f32 %v493_v7  ;;  %vm305_vm2 = vcmp.ge.f32.partialorder %v615_v2, 0.0 }
  0x14   : > { %v239_v13 = vmul.f32 1.442695, %v235_v9  ;;  %v241_v14 = vmul.f32 1.442695, %v236_v10  ;;  %v238_v16 = vsub.f32 0.0, %v234_v12  ;;  %v315_v43 = vmax.f32 %v611_v0, 0.0 }
  0x15   : > { %v243_v19 = vmul.f32 1.442695, %v237_v15  ;;  %v374_v21 = vadd.f32 %v626_v18, %v624_v17  ;;  %v229_v36 = vsub.f32 1.0, %v624_v17  ;;  %v230_v37 = vsub.f32 1.0, %v626_v18 }
  0x16   : > { %520 = vpow2.f32 %v239_v13  ;;  %v245_v20 = vmul.f32 1.442695, %v238_v16  ;;  %v316_v44 = vmax.f32 %v613_v1, 0.0  ;;  %vm306_vm3 = vcmp.ge.f32.partialorder %v619_v8, 0.0 }
  0x17   : > { %522 = vpow2.f32 %v241_v14  ;;  %485 = vst [vmem:[%s633_s24 + $0x30] sm:$0xff] %v374_v21  ;;  %v317_v48 = vmax.f32 %v615_v2, 0.0  ;;  %v318_v49 = vmax.f32 %v619_v8, 0.0 }
  0x18   : > { %524 = vpow2.f32 %v243_v19 }
  0x19   : > { %526 = vpow2.f32 %v245_v20 }
  0x23   : > { %v636_v22 = vpop.eup %520 }
  0x24   : > { %v638_v23 = vpop.eup %522  ;;  %v247_v24 = vadd.f32 1.0, %v636_v22  ;;  %v250_v30 = vmul.f32 -0.5, %v636_v22  ;;  %v253_v33 = vand.u32 2147483647, %v636_v22 }
  0x25   : > { %v641_v25 = vpop.eup %524  ;;  %v256_v26 = vadd.f32 1.0, %v638_v23  ;;  %v259_v31 = vmul.f32 -0.5, %v638_v23  ;;  %v262_v34 = vand.u32 2147483647, %v638_v23 }
  0x26   : > { %v644_v27 = vpop.eup %526  ;;  %528 = vrcp.f32 %v247_v24  ;;  %v265_v28 = vadd.f32 1.0, %v641_v25  ;;  %v268_v32 = vmul.f32 -0.5, %v641_v25  ;;  %v251_v38 = vadd.f32 1.0, %v250_v30 }
  0x27   : > { %530 = vrcp.f32 %v256_v26  ;;  %v274_v29 = vadd.f32 1.0, %v644_v27  ;;  %v277_v35 = vmul.f32 -0.5, %v644_v27  ;;  %v260_v39 = vadd.f32 1.0, %v259_v31 }
  0x28   : > { %532 = vrcp.f32 %v265_v28  ;;  %v271_v41 = vand.u32 2147483647, %v641_v25  ;;  %v280_v42 = vand.u32 2147483647, %v644_v27  ;;  %v269_v47 = vadd.f32 1.0, %v268_v32 }
  0x29   : > { %534 = vrcp.f32 %v274_v29  ;;  %vm666_vm4 = vcmp.lt.f32.partialorder %v253_v33, 0.0004427343  ;;  %vm670_vm5 = vcmp.lt.f32.partialorder %v262_v34, 0.0004427343  ;;  %v278_v54 = vadd.f32 1.0, %v277_v35 }
  0x2a   : > { %536 = vlog2.f32 %v247_v24  ;;  %v252_v58 = vmul.f32 %v636_v22, %v251_v38  ;;  %v261_v59 = vmul.f32 %v638_v23, %v260_v39  ;;  %vm676_vm6 = vcmp.lt.f32.partialorder %v271_v41, 0.0004427343 }
  0x2b   : > { %538 = vlog2.f32 %v256_v26  ;;  %vm680_vm7 = vcmp.lt.f32.partialorder %v280_v42, 0.0004427343  ;;  %v270_v9 = vmul.f32 %v641_v25, %v269_v47  ;;  %v279_v14 = vmul.f32 %v644_v27, %v278_v54 }
  0x2c   : > { %540 = vlog2.f32 %v265_v28 }
  0x2d   : > { %542 = vlog2.f32 %v274_v29 }
  0x33   : > { %v529_v40 = vpop.eup %528 }
  0x34   : > { %v531_v45 = vpop.eup %530  ;;  %v291_v46 = vmul.f32 %v529_v40, %v247_v24 }
  0x35   : > { %v533_v50 = vpop.eup %532  ;;  %v292_v51 = vmul.f32 %v531_v45, %v256_v26 }
  0x36   : > { %v535_v55 = vpop.eup %534  ;;  %v295_v56 = vsub.f32 2.0, %v291_v46  ;;  %v293_v57 = vmul.f32 %v533_v50, %v265_v28 }
  0x37   : > { %v537_v60 = vpop.eup %536  ;;  %v296_v61 = vsub.f32 2.0, %v292_v51  ;;  %v294_v62 = vmul.f32 %v535_v55, %v274_v29 }
  0x38   : > { %v539_v4 = vpop.eup %538  ;;  %v299_v5 = vmul.f32 %v529_v40, %v295_v56  ;;  %v297_v6 = vsub.f32 2.0, %v293_v57  ;;  %v249_v7 = vmul.f32 0.6931472, %v537_v60 }
  0x39   : > { %v541_v10 = vpop.eup %540  ;;  %v300_v11 = vmul.f32 %v531_v45, %v296_v61  ;;  %v298_v12 = vsub.f32 2.0, %v294_v62  ;;  %v258_v13 = vmul.f32 0.6931472, %v539_v4 }
  0x3a   : > { %v543_v15 = vpop.eup %542  ;;  %v307_v16 = vmul.f32 %v636_v22, %v299_v5  ;;  %v301_v19 = vmul.f32 %v533_v50, %v297_v6  ;;  %v255_v20 = vsel %vm666_vm4, %v252_v58, %v249_v7  ;;  %v267_v21 = vmul.f32 0.6931472, %v541_v10 }
  0x3b   : > { %v308_v24 = vmul.f32 %v638_v23, %v300_v11  ;;  %v302_v26 = vmul.f32 %v535_v55, %v298_v12  ;;  %v264_v28 = vsel %vm670_vm5, %v261_v59, %v258_v13  ;;  %v276_v29 = vmul.f32 0.6931472, %v543_v15 }
  0x3c   : > { %v311_v30 = vsel %vm303_vm0, %v299_v5, %v307_v16  ;;  %v309_v31 = vmul.f32 %v641_v25, %v301_v19  ;;  %v273_v22 = vsel %vm676_vm6, %v270_v9, %v267_v21  ;;  %v319_v32 = vadd.f32 %v315_v43, %v255_v20 }
  0x3d   : > { %v312_v33 = vsel %vm304_vm1, %v300_v11, %v308_v24  ;;  %v327_v23 = vmul.f32 %v311_v30, %v229_v36  ;;  %v310_v34 = vmul.f32 %v644_v27, %v302_v26  ;;  %v331_v35 = vmul.f32 %v311_v30, %v311_v30 }
  0x3e   : > { %v328_v38 = vmul.f32 %v312_v33, %v230_v37  ;;  %v313_v39 = vsel %vm305_vm2, %v301_v19, %v309_v31  ;;  %v332_v25 = vmul.f32 %v312_v33, %v312_v33  ;;  %v282_v40 = vsel %vm680_vm7, %v279_v14, %v276_v29 }
  0x3f   : > { %v314_v41 = vsel %vm306_vm3, %v302_v26, %v310_v34  ;;  %v329_v42 = vmul.f32 %v313_v39, %v624_v17  ;;  %v333_v43 = vmul.f32 %v313_v39, %v313_v39  ;;  %v320_v45 = vadd.f32 %v316_v44, %v264_v28 }
  0x40   : > { %v344_v27 = vadd.f32 %v328_v38, %v327_v23  ;;  %v330_v46 = vmul.f32 %v314_v41, %v626_v18  ;;  %v354_v47 = vadd.f32 %v332_v25, %v331_v35  ;;  %v334_v50 = vmul.f32 %v314_v41, %v314_v41 }
  0x41   : > { %v321_v51 = vadd.f32 %v317_v48, %v273_v22  ;;  %v322_v52 = vadd.f32 %v318_v49, %v282_v40  ;;  %v323_v53 = vsub.f32 %v319_v32, %v611_v0  ;;  %v324_v54 = vsub.f32 %v320_v45, %v613_v1 }
  0x42   : > { %v349_v55 = vadd.f32 %v330_v46, %v329_v42  ;;  %v359_v56 = vadd.f32 %v334_v50, %v333_v43  ;;  %346 = vst [vmem:[%s633_s24] sm:$0xff] %v344_v27  ;;  %477 = vst [vmem:[%s633_s24 + $0x10] sm:$0xff] %v354_v47 }
  0x43   : > { %v325_v57 = vsub.f32 %v321_v51, %v615_v2  ;;  %v326_v44 = vsub.f32 %v322_v52, %v619_v8  ;;  %v339_v58 = vadd.f32 %v321_v51, %v319_v32  ;;  %v340_v59 = vadd.f32 %v322_v52, %v320_v45 }
  0x44   : > { %475 = vst [vmem:[%s633_s24 + $0x8] sm:$0xff] %v349_v55  ;;  %479 = vst [vmem:[%s633_s24 + $0x18] sm:$0xff] %v359_v56 }
  0x45   : > { %v335_v48 = vadd.f32 %v325_v57, %v323_v53  ;;  %v336_v60 = vadd.f32 %v326_v44, %v324_v54  ;;  %v341_v49 = vmul.f32 %v339_v58, %v229_v36  ;;  %v342_v0 = vmul.f32 %v340_v59, %v230_v37 }
  0x47   : > { %v337_v1 = vmul.f32 %v335_v48, %v624_v17  ;;  %v338_v2 = vmul.f32 %v336_v60, %v626_v18  ;;  %v369_v8 = vadd.f32 %v342_v0, %v341_v49 }
  0x49   : > { %v364_v61 = vadd.f32 %v338_v2, %v337_v1  ;;  %483 = vst [vmem:[%s633_s24 + $0x28] sm:$0xff] %v369_v8 }
  0x4b   : > { %481 = vst [vmem:[%s633_s24 + $0x20] sm:$0xff] %v364_v61 }
  0x4c PF: > { %s12_s11 = sadd.s32 1, %s566_s11   ;;  %s748_s9 = smov %s562_s10 }
  0x4d   : > { %p9_p5 = scmp.ge.s32.totalorder %s12_s11, 4   ;;  %s749_s10 = smov %s751_s12 }
  0x4f   :  { %11 = sbr.rel (!%p9_p5) target bundleno = 2 (0x2), region = 71 }

</bundles_post_ra>
